<compile_context>
chip_gen: v6e
topology: v6e:2x2x1
jax: 0.10.0
libtpu: 0.0.40
codegen_flags: <defaults>
</compile_context>

<pallas_src>
import jax
import jax.numpy as jnp
from jax.experimental import pallas as pl
from jax.experimental.pallas import tpu as pltpu


def lstm_tagger_kernel(ids_ref, emb_ref, wih_ref, whh_ref, b_ref, wout_ref,
                       bout_ref, tags_ref, emx_ref, gx_ref, hs_ref):
    """Fused LSTM tagger forward.

    ids_ref    : (T,)    int32 token ids (SMEM, scalar-prefetched)
    emb_ref    : (V, E)  embedding table (VMEM)
    wih_ref    : (E, 4H) input->gates weights (transposed PyTorch weight_ih)
    whh_ref    : (H, 4H) hidden->gates weights (transposed PyTorch weight_hh)
    b_ref      : (1, 4H) bias_ih + bias_hh
    wout_ref   : (H, Kp) output projection, padded to lane-dense width
    bout_ref   : (1, Kp) output projection bias (pad lanes = -1e30)
    tags_ref   : (T, Kp) log-softmax outputs (lane-dense)
    emx_ref    : (T, E)  VMEM scratch: gathered embeddings
    gx_ref     : (T, 4H) VMEM scratch: batched input projection + bias
    hs_ref     : (T, H)  VMEM scratch: per-step hidden states
    """
    T = gx_ref.shape[0]
    H = whh_ref.shape[0]

    # In-kernel embedding gather: T dynamic-row reads from the VMEM table,
    # driven by SMEM token ids.  T is tiny and static -> plain unrolled copies.
    for t in range(T):
        emx_ref[pl.ds(t, 1), :] = emb_ref[pl.ds(ids_ref[t], 1), :]

    # Hoisted weight/bias loads: live in vregs across the unrolled recurrence.
    whh = whh_ref[...]                                   # (H, 4H)
    b = b_ref[...]                                       # (1, 4H)

    # One batched MXU call for the input projection of ALL timesteps.
    gx_ref[...] = jnp.dot(emx_ref[...], wih_ref[...],
                          preferred_element_type=jnp.float32) + b    # (T, 4H)

    def step(t, carry):
        h, c = carry                                     # (1, H) each, vregs
        # Single matmul on the serial critical path.
        gates = gx_ref[pl.ds(t, 1), :] + jnp.dot(
            h, whh, preferred_element_type=jnp.float32)  # (1, 4H)

        # Two EUP passes over the full 4H-lane vreg, then slice per gate.
        sig = jax.nn.sigmoid(gates)
        tnh = jnp.tanh(gates)
        # PyTorch LSTM gate order: i, f, g, o
        i_g = sig[:, 0:H]
        f_g = sig[:, H:2 * H]
        g_g = tnh[:, 2 * H:3 * H]
        o_g = sig[:, 3 * H:4 * H]

        c_new = f_g * c + i_g * g_g
        h_new = o_g * jnp.tanh(c_new)
        hs_ref[pl.ds(t, 1), :] = h_new
        return (h_new, c_new)

    # PyTorch init_hidden(): zeros.  Fully unrolled (T is static, small).
    h0 = jnp.zeros((1, H), jnp.float32)
    c0 = jnp.zeros((1, H), jnp.float32)
    jax.lax.fori_loop(0, T, step, (h0, c0), unroll=True)

    # Batched output projection + log_softmax, single lane-dense store.
    logits = jnp.dot(hs_ref[...], wout_ref[...],
                     preferred_element_type=jnp.float32) + bout_ref[...]   # (T, Kp)
    m = jnp.max(logits, axis=1, keepdims=True)
    lse = m + jnp.log(jnp.sum(jnp.exp(logits - m), axis=1, keepdims=True))
    tags_ref[...] = logits - lse


def lstm_tagger_forward(token_ids, params):
    """Full module forward as a single fused Pallas kernel."""
    emb_table = params["embedding"].astype(jnp.float32)   # (V, E)
    w_ih = params["w_ih"]                                  # (4H, E)  PyTorch layout
    w_hh = params["w_hh"]                                  # (4H, H)
    b_ih = params["b_ih"]                                  # (4H,)
    b_hh = params["b_hh"]                                  # (4H,)
    w_out = params["w_out"]                                # (K, H)
    b_out = params["b_out"]                                # (K,)

    T = token_ids.shape[0]
    V, E = emb_table.shape
    H = w_hh.shape[1]
    K = w_out.shape[0]
    KP = 128                                               # lane-dense output width

    wih_t = w_ih.T.astype(jnp.float32)                     # (E, 4H)
    whh_t = w_hh.T.astype(jnp.float32)                     # (H, 4H)
    bias = (b_ih + b_hh).reshape(1, 4 * H).astype(jnp.float32)
    # Pad the output projection to 128 lanes; padded logits get bias -1e30 so
    # they vanish in the softmax and are sliced away below.
    wout_pad = jnp.zeros((H, KP), jnp.float32).at[:, :K].set(w_out.T)
    bout_pad = jnp.full((1, KP), -1e30, jnp.float32).at[0, :K].set(b_out)

    def full_spec(shape):
        # Single-iteration grid; index_map gets (grid_idx, ids_prefetch_ref).
        return pl.BlockSpec(shape, lambda i, ids: (0, 0))

    grid_spec = pltpu.PrefetchScalarGridSpec(
        num_scalar_prefetch=1,                 # token ids -> SMEM
        grid=(1,),
        in_specs=[
            full_spec((V, E)),
            full_spec((E, 4 * H)),
            full_spec((H, 4 * H)),
            full_spec((1, 4 * H)),
            full_spec((H, KP)),
            full_spec((1, KP)),
        ],
        out_specs=full_spec((T, KP)),
        scratch_shapes=[
            pltpu.VMEM((T, E), jnp.float32),        # emx: gathered embeddings
            pltpu.VMEM((T, 4 * H), jnp.float32),    # gx : batched input projection
            pltpu.VMEM((T, H), jnp.float32),        # hs : per-step hidden states
        ],
    )

    tags_padded = pl.pallas_call(
        lstm_tagger_kernel,
        out_shape=jax.ShapeDtypeStruct((T, KP), jnp.float32),
        grid_spec=grid_spec,
        compiler_params=pltpu.CompilerParams(
            dimension_semantics=("arbitrary",)),
    )(token_ids.astype(jnp.int32), emb_table, wih_t, whh_t, bias,
      wout_pad, bout_pad)

    return tags_padded[:, :K]


def reference_forward(token_ids, params):
    """Pure-JAX reference mirroring the PyTorch semantics."""
    embeds = jnp.take(params["embedding"], token_ids, axis=0)
    H = params["w_hh"].shape[1]
    h = jnp.zeros((1, H), jnp.float32)
    c = jnp.zeros((1, H), jnp.float32)
    wih_t = params["w_ih"].T
    whh_t = params["w_hh"].T
    b = (params["b_ih"] + params["b_hh"]).reshape(1, -1)
    outs = []
    for t in range(embeds.shape[0]):
        x = embeds[t:t + 1]
        gates = x @ wih_t + h @ whh_t + b
        i = jax.nn.sigmoid(gates[:, 0:H])
        f = jax.nn.sigmoid(gates[:, H:2 * H])
        g = jnp.tanh(gates[:, 2 * H:3 * H])
        o = jax.nn.sigmoid(gates[:, 3 * H:4 * H])
        c = f * c + i * g
        h = o * jnp.tanh(c)
        outs.append(h)
    out = jnp.concatenate(outs, axis=0)                      # (T, H)
    logits = out @ params["w_out"].T + params["b_out"]       # (T, K)
    return jax.nn.log_softmax(logits, axis=1)


def make_params(key, vocab_size, embedding_dim, hidden_dim, target_size):
    ks = jax.random.split(key, 7)
    s = 0.1
    return {
        "embedding": s * jax.random.normal(ks[0], (vocab_size, embedding_dim), jnp.float32),
        "w_ih": s * jax.random.normal(ks[1], (4 * hidden_dim, embedding_dim), jnp.float32),
        "w_hh": s * jax.random.normal(ks[2], (4 * hidden_dim, hidden_dim), jnp.float32),
        "b_ih": s * jax.random.normal(ks[3], (4 * hidden_dim,), jnp.float32),
        "b_hh": s * jax.random.normal(ks[4], (4 * hidden_dim,), jnp.float32),
        "w_out": s * jax.random.normal(ks[5], (target_size, hidden_dim), jnp.float32),
        "b_out": s * jax.random.normal(ks[6], (target_size,), jnp.float32),
    }


if __name__ == "__main__":
    vocab_size = 20
    embedding_dim = 32
    hidden_dim = 32
    target_size = 8
    seq_len = 8

    key = jax.random.PRNGKey(0)
    pkey, ikey = jax.random.split(key)
    params = make_params(pkey, vocab_size, embedding_dim, hidden_dim, target_size)
    token_ids = jax.random.randint(ikey, (seq_len,), 0, vocab_size)

    tags = lstm_tagger_forward(token_ids, params)
    tags = jax.block_until_ready(tags)

    ref = jax.block_until_ready(reference_forward(token_ids, params))
    assert tags.shape == (seq_len, target_size)
    assert jnp.allclose(tags, ref, atol=2e-3, rtol=2e-3), "mismatch vs JAX reference"

    print("KERNEL_OK")
</pallas_src>

<mosaic_0001>
module attributes {stable_mosaic.version = 11 : i64} {
  func.func @lstm_tagger_kernel(%arg0: i32, %arg1: memref<8xi32, #tpu.memory_space<smem>>, %arg2: memref<20x32xf32, #tpu.memory_space<vmem>>, %arg3: memref<32x128xf32, #tpu.memory_space<vmem>>, %arg4: memref<32x128xf32, #tpu.memory_space<vmem>>, %arg5: memref<1x128xf32, #tpu.memory_space<vmem>>, %arg6: memref<32x128xf32, #tpu.memory_space<vmem>>, %arg7: memref<1x128xf32, #tpu.memory_space<vmem>>, %arg8: memref<8x128xf32, #tpu.memory_space<vmem>>, %arg9: memref<8x32xf32, #tpu.memory_space<vmem>>, %arg10: memref<8x128xf32, #tpu.memory_space<vmem>>, %arg11: memref<8x32xf32, #tpu.memory_space<vmem>>) attributes {dimension_semantics = [#tpu.dimension_semantics<arbitrary>], iteration_bounds = array<i64: 1>, scalar_prefetch = 1 : i64, scratch_operands = 3 : i64, tpu.core_type = #tpu.core_type<tc>, window_params = [{pipeline_mode = #tpu.pipeline_mode<synchronous>, transform_indices = @transform_0, window_bounds = array<i64: 20, 32>}, {pipeline_mode = #tpu.pipeline_mode<synchronous>, transform_indices = @transform_1, window_bounds = array<i64: 32, 128>}, {pipeline_mode = #tpu.pipeline_mode<synchronous>, transform_indices = @transform_2, window_bounds = array<i64: 32, 128>}, {pipeline_mode = #tpu.pipeline_mode<synchronous>, transform_indices = @transform_3, window_bounds = array<i64: 1, 128>}, {pipeline_mode = #tpu.pipeline_mode<synchronous>, transform_indices = @transform_4, window_bounds = array<i64: 32, 128>}, {pipeline_mode = #tpu.pipeline_mode<synchronous>, transform_indices = @transform_5, window_bounds = array<i64: 1, 128>}, {pipeline_mode = #tpu.pipeline_mode<synchronous>, transform_indices = @transform_6, window_bounds = array<i64: 8, 128>}]} {
    %c0 = arith.constant 0 : index
    %0 = memref.load %arg1[%c0] : memref<8xi32, #tpu.memory_space<smem>>
    %1 = arith.index_cast %0 : i32 to index
    %c0_0 = arith.constant 0 : index
    %2 = vector.load %arg2[%1, %c0_0] : memref<20x32xf32, #tpu.memory_space<vmem>>, vector<1x32xf32>
    %c0_1 = arith.constant 0 : index
    %c0_2 = arith.constant 0 : index
    %3 = vector.load %arg9[%c0_1, %c0_2] : memref<8x32xf32, #tpu.memory_space<vmem>>, vector<1x32xf32>
    tpu.vector_store %arg9[%c0_1, %c0_2], %2 {strides = array<i32>} : memref<8x32xf32, #tpu.memory_space<vmem>>, vector<1x32xf32>,
    %c1 = arith.constant 1 : index
    %4 = memref.load %arg1[%c1] : memref<8xi32, #tpu.memory_space<smem>>
    %5 = arith.index_cast %4 : i32 to index
    %c0_3 = arith.constant 0 : index
    %6 = vector.load %arg2[%5, %c0_3] : memref<20x32xf32, #tpu.memory_space<vmem>>, vector<1x32xf32>
    %c1_4 = arith.constant 1 : index
    %c0_5 = arith.constant 0 : index
    %7 = vector.load %arg9[%c1_4, %c0_5] : memref<8x32xf32, #tpu.memory_space<vmem>>, vector<1x32xf32>
    tpu.vector_store %arg9[%c1_4, %c0_5], %6 {strides = array<i32>} : memref<8x32xf32, #tpu.memory_space<vmem>>, vector<1x32xf32>,
    %c2 = arith.constant 2 : index
    %8 = memref.load %arg1[%c2] : memref<8xi32, #tpu.memory_space<smem>>
    %9 = arith.index_cast %8 : i32 to index
    %c0_6 = arith.constant 0 : index
    %10 = vector.load %arg2[%9, %c0_6] : memref<20x32xf32, #tpu.memory_space<vmem>>, vector<1x32xf32>
    %c2_7 = arith.constant 2 : index
    %c0_8 = arith.constant 0 : index
    %11 = vector.load %arg9[%c2_7, %c0_8] : memref<8x32xf32, #tpu.memory_space<vmem>>, vector<1x32xf32>
    tpu.vector_store %arg9[%c2_7, %c0_8], %10 {strides = array<i32>} : memref<8x32xf32, #tpu.memory_space<vmem>>, vector<1x32xf32>,
    %c3 = arith.constant 3 : index
    %12 = memref.load %arg1[%c3] : memref<8xi32, #tpu.memory_space<smem>>
    %13 = arith.index_cast %12 : i32 to index
    %c0_9 = arith.constant 0 : index
    %14 = vector.load %arg2[%13, %c0_9] : memref<20x32xf32, #tpu.memory_space<vmem>>, vector<1x32xf32>
    %c3_10 = arith.constant 3 : index
    %c0_11 = arith.constant 0 : index
    %15 = vector.load %arg9[%c3_10, %c0_11] : memref<8x32xf32, #tpu.memory_space<vmem>>, vector<1x32xf32>
    tpu.vector_store %arg9[%c3_10, %c0_11], %14 {strides = array<i32>} : memref<8x32xf32, #tpu.memory_space<vmem>>, vector<1x32xf32>,
    %c4 = arith.constant 4 : index
    %16 = memref.load %arg1[%c4] : memref<8xi32, #tpu.memory_space<smem>>
    %17 = arith.index_cast %16 : i32 to index
    %c0_12 = arith.constant 0 : index
    %18 = vector.load %arg2[%17, %c0_12] : memref<20x32xf32, #tpu.memory_space<vmem>>, vector<1x32xf32>
    %c4_13 = arith.constant 4 : index
    %c0_14 = arith.constant 0 : index
    %19 = vector.load %arg9[%c4_13, %c0_14] : memref<8x32xf32, #tpu.memory_space<vmem>>, vector<1x32xf32>
    tpu.vector_store %arg9[%c4_13, %c0_14], %18 {strides = array<i32>} : memref<8x32xf32, #tpu.memory_space<vmem>>, vector<1x32xf32>,
    %c5 = arith.constant 5 : index
    %20 = memref.load %arg1[%c5] : memref<8xi32, #tpu.memory_space<smem>>
    %21 = arith.index_cast %20 : i32 to index
    %c0_15 = arith.constant 0 : index
    %22 = vector.load %arg2[%21, %c0_15] : memref<20x32xf32, #tpu.memory_space<vmem>>, vector<1x32xf32>
    %c5_16 = arith.constant 5 : index
    %c0_17 = arith.constant 0 : index
    %23 = vector.load %arg9[%c5_16, %c0_17] : memref<8x32xf32, #tpu.memory_space<vmem>>, vector<1x32xf32>
    tpu.vector_store %arg9[%c5_16, %c0_17], %22 {strides = array<i32>} : memref<8x32xf32, #tpu.memory_space<vmem>>, vector<1x32xf32>,
    %c6 = arith.constant 6 : index
    %24 = memref.load %arg1[%c6] : memref<8xi32, #tpu.memory_space<smem>>
    %25 = arith.index_cast %24 : i32 to index
    %c0_18 = arith.constant 0 : index
    %26 = vector.load %arg2[%25, %c0_18] : memref<20x32xf32, #tpu.memory_space<vmem>>, vector<1x32xf32>
    %c6_19 = arith.constant 6 : index
    %c0_20 = arith.constant 0 : index
    %27 = vector.load %arg9[%c6_19, %c0_20] : memref<8x32xf32, #tpu.memory_space<vmem>>, vector<1x32xf32>
    tpu.vector_store %arg9[%c6_19, %c0_20], %26 {strides = array<i32>} : memref<8x32xf32, #tpu.memory_space<vmem>>, vector<1x32xf32>,
    %c7 = arith.constant 7 : index
    %28 = memref.load %arg1[%c7] : memref<8xi32, #tpu.memory_space<smem>>
    %29 = arith.index_cast %28 : i32 to index
    %c0_21 = arith.constant 0 : index
    %30 = vector.load %arg2[%29, %c0_21] : memref<20x32xf32, #tpu.memory_space<vmem>>, vector<1x32xf32>
    %c7_22 = arith.constant 7 : index
    %c0_23 = arith.constant 0 : index
    %31 = vector.load %arg9[%c7_22, %c0_23] : memref<8x32xf32, #tpu.memory_space<vmem>>, vector<1x32xf32>
    tpu.vector_store %arg9[%c7_22, %c0_23], %30 {strides = array<i32>} : memref<8x32xf32, #tpu.memory_space<vmem>>, vector<1x32xf32>,
    %c0_24 = arith.constant 0 : index
    %c0_25 = arith.constant 0 : index
    %32 = vector.load %arg4[%c0_24, %c0_25] : memref<32x128xf32, #tpu.memory_space<vmem>>, vector<32x128xf32>
    %c0_26 = arith.constant 0 : index
    %c0_27 = arith.constant 0 : index
    %33 = vector.load %arg5[%c0_26, %c0_27] : memref<1x128xf32, #tpu.memory_space<vmem>>, vector<1x128xf32>
    %c0_28 = arith.constant 0 : index
    %c0_29 = arith.constant 0 : index
    %34 = vector.load %arg9[%c0_28, %c0_29] : memref<8x32xf32, #tpu.memory_space<vmem>>, vector<8x32xf32>
    %c0_30 = arith.constant 0 : index
    %c0_31 = arith.constant 0 : index
    %35 = vector.load %arg3[%c0_30, %c0_31] : memref<32x128xf32, #tpu.memory_space<vmem>>, vector<32x128xf32>
    %cst = arith.constant dense<0.000000e+00> : vector<8x128xf32>
    %36 = tpu.matmul %34, %35, %cst {dimension_numbers = #tpu.dot_dimension_numbers<[1], [0], [0], [1], [0, 0, 1, 1], [], []>} : vector<8x32xf32>, vector<32x128xf32>, vector<8x128xf32> -> vector<8x128xf32>
    %37 = vector.broadcast %33 : vector<1x128xf32> to vector<8x128xf32>
    %38 = arith.addf %36, %37 : vector<8x128xf32>
    %c0_32 = arith.constant 0 : index
    %c0_33 = arith.constant 0 : index
    %39 = vector.load %arg10[%c0_32, %c0_33] : memref<8x128xf32, #tpu.memory_space<vmem>>, vector<8x128xf32>
    tpu.vector_store %arg10[%c0_32, %c0_33], %38 {strides = array<i32>} : memref<8x128xf32, #tpu.memory_space<vmem>>, vector<8x128xf32>,
    %cst_34 = arith.constant 0.000000e+00 : f32
    %40 = vector.broadcast %cst_34 : f32 to vector<1x32xf32>
    %cst_35 = arith.constant 0.000000e+00 : f32
    %41 = vector.broadcast %cst_35 : f32 to vector<1x32xf32>
    %c0_i32 = arith.constant 0 : i32
    %42 = arith.index_cast %c0_i32 : i32 to index
    %c0_36 = arith.constant 0 : index
    %43 = vector.load %arg10[%42, %c0_36] : memref<8x128xf32, #tpu.memory_space<vmem>>, vector<1x128xf32>
    %cst_37 = arith.constant dense<0.000000e+00> : vector<1x128xf32>
    %44 = tpu.matmul %40, %32, %cst_37 {dimension_numbers = #tpu.dot_dimension_numbers<[1], [0], [0], [1], [0, 0, 1, 1], [], []>} : vector<1x32xf32>, vector<32x128xf32>, vector<1x128xf32> -> vector<1x128xf32>
    %45 = arith.addf %43, %44 : vector<1x128xf32>
    %46 = arith.negf %45 : vector<1x128xf32>
    %47 = math.exp %46 : vector<1x128xf32>
    %cst_38 = arith.constant 1.000000e+00 : f32
    %48 = vector.broadcast %cst_38 : f32 to vector<1x128xf32>
    %49 = arith.addf %48, %47 : vector<1x128xf32>
    %50 = arith.divf %48, %49 : vector<1x128xf32>
    %51 = math.tanh %45 : vector<1x128xf32>
    %52 = vector.extract_strided_slice %50 {offsets = [0, 0], sizes = [1, 32], strides = [1, 1]} : vector<1x128xf32> to vector<1x32xf32>
    %53 = vector.extract_strided_slice %50 {offsets = [0, 32], sizes = [1, 32], strides = [1, 1]} : vector<1x128xf32> to vector<1x32xf32>
    %54 = vector.extract_strided_slice %51 {offsets = [0, 64], sizes = [1, 32], strides = [1, 1]} : vector<1x128xf32> to vector<1x32xf32>
    %55 = vector.extract_strided_slice %50 {offsets = [0, 96], sizes = [1, 32], strides = [1, 1]} : vector<1x128xf32> to vector<1x32xf32>
    %56 = arith.mulf %53, %41 : vector<1x32xf32>
    %57 = arith.mulf %52, %54 : vector<1x32xf32>
    %58 = arith.addf %56, %57 : vector<1x32xf32>
    %59 = math.tanh %58 : vector<1x32xf32>
    %60 = arith.mulf %55, %59 : vector<1x32xf32>
    %61 = arith.index_cast %c0_i32 : i32 to index
    %c0_39 = arith.constant 0 : index
    %62 = vector.load %arg11[%61, %c0_39] : memref<8x32xf32, #tpu.memory_space<vmem>>, vector<1x32xf32>
    tpu.vector_store %arg11[%61, %c0_39], %60 {strides = array<i32>} : memref<8x32xf32, #tpu.memory_space<vmem>>, vector<1x32xf32>,
    %c1_i32 = arith.constant 1 : i32
    %63 = arith.index_cast %c1_i32 : i32 to index
    %c0_40 = arith.constant 0 : index
    %64 = vector.load %arg10[%63, %c0_40] : memref<8x128xf32, #tpu.memory_space<vmem>>, vector<1x128xf32>
    %cst_41 = arith.constant dense<0.000000e+00> : vector<1x128xf32>
    %65 = tpu.matmul %60, %32, %cst_41 {dimension_numbers = #tpu.dot_dimension_numbers<[1], [0], [0], [1], [0, 0, 1, 1], [], []>} : vector<1x32xf32>, vector<32x128xf32>, vector<1x128xf32> -> vector<1x128xf32>
    %66 = arith.addf %64, %65 : vector<1x128xf32>
    %67 = arith.negf %66 : vector<1x128xf32>
    %68 = math.exp %67 : vector<1x128xf32>
    %cst_42 = arith.constant 1.000000e+00 : f32
    %69 = vector.broadcast %cst_42 : f32 to vector<1x128xf32>
    %70 = arith.addf %69, %68 : vector<1x128xf32>
    %71 = arith.divf %69, %70 : vector<1x128xf32>
    %72 = math.tanh %66 : vector<1x128xf32>
    %73 = vector.extract_strided_slice %71 {offsets = [0, 0], sizes = [1, 32], strides = [1, 1]} : vector<1x128xf32> to vector<1x32xf32>
    %74 = vector.extract_strided_slice %71 {offsets = [0, 32], sizes = [1, 32], strides = [1, 1]} : vector<1x128xf32> to vector<1x32xf32>
    %75 = vector.extract_strided_slice %72 {offsets = [0, 64], sizes = [1, 32], strides = [1, 1]} : vector<1x128xf32> to vector<1x32xf32>
    %76 = vector.extract_strided_slice %71 {offsets = [0, 96], sizes = [1, 32], strides = [1, 1]} : vector<1x128xf32> to vector<1x32xf32>
    %77 = arith.mulf %74, %58 : vector<1x32xf32>
    %78 = arith.mulf %73, %75 : vector<1x32xf32>
    %79 = arith.addf %77, %78 : vector<1x32xf32>
    %80 = math.tanh %79 : vector<1x32xf32>
    %81 = arith.mulf %76, %80 : vector<1x32xf32>
    %82 = arith.index_cast %c1_i32 : i32 to index
    %c0_43 = arith.constant 0 : index
    %83 = vector.load %arg11[%82, %c0_43] : memref<8x32xf32, #tpu.memory_space<vmem>>, vector<1x32xf32>
    tpu.vector_store %arg11[%82, %c0_43], %81 {strides = array<i32>} : memref<8x32xf32, #tpu.memory_space<vmem>>, vector<1x32xf32>,
    %c2_i32 = arith.constant 2 : i32
    %84 = arith.index_cast %c2_i32 : i32 to index
    %c0_44 = arith.constant 0 : index
    %85 = vector.load %arg10[%84, %c0_44] : memref<8x128xf32, #tpu.memory_space<vmem>>, vector<1x128xf32>
    %cst_45 = arith.constant dense<0.000000e+00> : vector<1x128xf32>
    %86 = tpu.matmul %81, %32, %cst_45 {dimension_numbers = #tpu.dot_dimension_numbers<[1], [0], [0], [1], [0, 0, 1, 1], [], []>} : vector<1x32xf32>, vector<32x128xf32>, vector<1x128xf32> -> vector<1x128xf32>
    %87 = arith.addf %85, %86 : vector<1x128xf32>
    %88 = arith.negf %87 : vector<1x128xf32>
    %89 = math.exp %88 : vector<1x128xf32>
    %cst_46 = arith.constant 1.000000e+00 : f32
    %90 = vector.broadcast %cst_46 : f32 to vector<1x128xf32>
    %91 = arith.addf %90, %89 : vector<1x128xf32>
    %92 = arith.divf %90, %91 : vector<1x128xf32>
    %93 = math.tanh %87 : vector<1x128xf32>
    %94 = vector.extract_strided_slice %92 {offsets = [0, 0], sizes = [1, 32], strides = [1, 1]} : vector<1x128xf32> to vector<1x32xf32>
    %95 = vector.extract_strided_slice %92 {offsets = [0, 32], sizes = [1, 32], strides = [1, 1]} : vector<1x128xf32> to vector<1x32xf32>
    %96 = vector.extract_strided_slice %93 {offsets = [0, 64], sizes = [1, 32], strides = [1, 1]} : vector<1x128xf32> to vector<1x32xf32>
    %97 = vector.extract_strided_slice %92 {offsets = [0, 96], sizes = [1, 32], strides = [1, 1]} : vector<1x128xf32> to vector<1x32xf32>
    %98 = arith.mulf %95, %79 : vector<1x32xf32>
    %99 = arith.mulf %94, %96 : vector<1x32xf32>
    %100 = arith.addf %98, %99 : vector<1x32xf32>
    %101 = math.tanh %100 : vector<1x32xf32>
    %102 = arith.mulf %97, %101 : vector<1x32xf32>
    %103 = arith.index_cast %c2_i32 : i32 to index
    %c0_47 = arith.constant 0 : index
    %104 = vector.load %arg11[%103, %c0_47] : memref<8x32xf32, #tpu.memory_space<vmem>>, vector<1x32xf32>
    tpu.vector_store %arg11[%103, %c0_47], %102 {strides = array<i32>} : memref<8x32xf32, #tpu.memory_space<vmem>>, vector<1x32xf32>,
    %c3_i32 = arith.constant 3 : i32
    %105 = arith.index_cast %c3_i32 : i32 to index
    %c0_48 = arith.constant 0 : index
    %106 = vector.load %arg10[%105, %c0_48] : memref<8x128xf32, #tpu.memory_space<vmem>>, vector<1x128xf32>
    %cst_49 = arith.constant dense<0.000000e+00> : vector<1x128xf32>
    %107 = tpu.matmul %102, %32, %cst_49 {dimension_numbers = #tpu.dot_dimension_numbers<[1], [0], [0], [1], [0, 0, 1, 1], [], []>} : vector<1x32xf32>, vector<32x128xf32>, vector<1x128xf32> -> vector<1x128xf32>
    %108 = arith.addf %106, %107 : vector<1x128xf32>
    %109 = arith.negf %108 : vector<1x128xf32>
    %110 = math.exp %109 : vector<1x128xf32>
    %cst_50 = arith.constant 1.000000e+00 : f32
    %111 = vector.broadcast %cst_50 : f32 to vector<1x128xf32>
    %112 = arith.addf %111, %110 : vector<1x128xf32>
    %113 = arith.divf %111, %112 : vector<1x128xf32>
    %114 = math.tanh %108 : vector<1x128xf32>
    %115 = vector.extract_strided_slice %113 {offsets = [0, 0], sizes = [1, 32], strides = [1, 1]} : vector<1x128xf32> to vector<1x32xf32>
    %116 = vector.extract_strided_slice %113 {offsets = [0, 32], sizes = [1, 32], strides = [1, 1]} : vector<1x128xf32> to vector<1x32xf32>
    %117 = vector.extract_strided_slice %114 {offsets = [0, 64], sizes = [1, 32], strides = [1, 1]} : vector<1x128xf32> to vector<1x32xf32>
    %118 = vector.extract_strided_slice %113 {offsets = [0, 96], sizes = [1, 32], strides = [1, 1]} : vector<1x128xf32> to vector<1x32xf32>
    %119 = arith.mulf %116, %100 : vector<1x32xf32>
    %120 = arith.mulf %115, %117 : vector<1x32xf32>
    %121 = arith.addf %119, %120 : vector<1x32xf32>
    %122 = math.tanh %121 : vector<1x32xf32>
    %123 = arith.mulf %118, %122 : vector<1x32xf32>
    %124 = arith.index_cast %c3_i32 : i32 to index
    %c0_51 = arith.constant 0 : index
    %125 = vector.load %arg11[%124, %c0_51] : memref<8x32xf32, #tpu.memory_space<vmem>>, vector<1x32xf32>
    tpu.vector_store %arg11[%124, %c0_51], %123 {strides = array<i32>} : memref<8x32xf32, #tpu.memory_space<vmem>>, vector<1x32xf32>,
    %c4_i32 = arith.constant 4 : i32
    %126 = arith.index_cast %c4_i32 : i32 to index
    %c0_52 = arith.constant 0 : index
    %127 = vector.load %arg10[%126, %c0_52] : memref<8x128xf32, #tpu.memory_space<vmem>>, vector<1x128xf32>
    %cst_53 = arith.constant dense<0.000000e+00> : vector<1x128xf32>
    %128 = tpu.matmul %123, %32, %cst_53 {dimension_numbers = #tpu.dot_dimension_numbers<[1], [0], [0], [1], [0, 0, 1, 1], [], []>} : vector<1x32xf32>, vector<32x128xf32>, vector<1x128xf32> -> vector<1x128xf32>
    %129 = arith.addf %127, %128 : vector<1x128xf32>
    %130 = arith.negf %129 : vector<1x128xf32>
    %131 = math.exp %130 : vector<1x128xf32>
    %cst_54 = arith.constant 1.000000e+00 : f32
    %132 = vector.broadcast %cst_54 : f32 to vector<1x128xf32>
    %133 = arith.addf %132, %131 : vector<1x128xf32>
    %134 = arith.divf %132, %133 : vector<1x128xf32>
    %135 = math.tanh %129 : vector<1x128xf32>
    %136 = vector.extract_strided_slice %134 {offsets = [0, 0], sizes = [1, 32], strides = [1, 1]} : vector<1x128xf32> to vector<1x32xf32>
    %137 = vector.extract_strided_slice %134 {offsets = [0, 32], sizes = [1, 32], strides = [1, 1]} : vector<1x128xf32> to vector<1x32xf32>
    %138 = vector.extract_strided_slice %135 {offsets = [0, 64], sizes = [1, 32], strides = [1, 1]} : vector<1x128xf32> to vector<1x32xf32>
    %139 = vector.extract_strided_slice %134 {offsets = [0, 96], sizes = [1, 32], strides = [1, 1]} : vector<1x128xf32> to vector<1x32xf32>
    %140 = arith.mulf %137, %121 : vector<1x32xf32>
    %141 = arith.mulf %136, %138 : vector<1x32xf32>
    %142 = arith.addf %140, %141 : vector<1x32xf32>
    %143 = math.tanh %142 : vector<1x32xf32>
    %144 = arith.mulf %139, %143 : vector<1x32xf32>
    %145 = arith.index_cast %c4_i32 : i32 to index
    %c0_55 = arith.constant 0 : index
    %146 = vector.load %arg11[%145, %c0_55] : memref<8x32xf32, #tpu.memory_space<vmem>>, vector<1x32xf32>
    tpu.vector_store %arg11[%145, %c0_55], %144 {strides = array<i32>} : memref<8x32xf32, #tpu.memory_space<vmem>>, vector<1x32xf32>,
    %c5_i32 = arith.constant 5 : i32
    %147 = arith.index_cast %c5_i32 : i32 to index
    %c0_56 = arith.constant 0 : index
    %148 = vector.load %arg10[%147, %c0_56] : memref<8x128xf32, #tpu.memory_space<vmem>>, vector<1x128xf32>
    %cst_57 = arith.constant dense<0.000000e+00> : vector<1x128xf32>
    %149 = tpu.matmul %144, %32, %cst_57 {dimension_numbers = #tpu.dot_dimension_numbers<[1], [0], [0], [1], [0, 0, 1, 1], [], []>} : vector<1x32xf32>, vector<32x128xf32>, vector<1x128xf32> -> vector<1x128xf32>
    %150 = arith.addf %148, %149 : vector<1x128xf32>
    %151 = arith.negf %150 : vector<1x128xf32>
    %152 = math.exp %151 : vector<1x128xf32>
    %cst_58 = arith.constant 1.000000e+00 : f32
    %153 = vector.broadcast %cst_58 : f32 to vector<1x128xf32>
    %154 = arith.addf %153, %152 : vector<1x128xf32>
    %155 = arith.divf %153, %154 : vector<1x128xf32>
    %156 = math.tanh %150 : vector<1x128xf32>
    %157 = vector.extract_strided_slice %155 {offsets = [0, 0], sizes = [1, 32], strides = [1, 1]} : vector<1x128xf32> to vector<1x32xf32>
    %158 = vector.extract_strided_slice %155 {offsets = [0, 32], sizes = [1, 32], strides = [1, 1]} : vector<1x128xf32> to vector<1x32xf32>
    %159 = vector.extract_strided_slice %156 {offsets = [0, 64], sizes = [1, 32], strides = [1, 1]} : vector<1x128xf32> to vector<1x32xf32>
    %160 = vector.extract_strided_slice %155 {offsets = [0, 96], sizes = [1, 32], strides = [1, 1]} : vector<1x128xf32> to vector<1x32xf32>
    %161 = arith.mulf %158, %142 : vector<1x32xf32>
    %162 = arith.mulf %157, %159 : vector<1x32xf32>
    %163 = arith.addf %161, %162 : vector<1x32xf32>
    %164 = math.tanh %163 : vector<1x32xf32>
    %165 = arith.mulf %160, %164 : vector<1x32xf32>
    %166 = arith.index_cast %c5_i32 : i32 to index
    %c0_59 = arith.constant 0 : index
    %167 = vector.load %arg11[%166, %c0_59] : memref<8x32xf32, #tpu.memory_space<vmem>>, vector<1x32xf32>
    tpu.vector_store %arg11[%166, %c0_59], %165 {strides = array<i32>} : memref<8x32xf32, #tpu.memory_space<vmem>>, vector<1x32xf32>,
    %c6_i32 = arith.constant 6 : i32
    %168 = arith.index_cast %c6_i32 : i32 to index
    %c0_60 = arith.constant 0 : index
    %169 = vector.load %arg10[%168, %c0_60] : memref<8x128xf32, #tpu.memory_space<vmem>>, vector<1x128xf32>
    %cst_61 = arith.constant dense<0.000000e+00> : vector<1x128xf32>
    %170 = tpu.matmul %165, %32, %cst_61 {dimension_numbers = #tpu.dot_dimension_numbers<[1], [0], [0], [1], [0, 0, 1, 1], [], []>} : vector<1x32xf32>, vector<32x128xf32>, vector<1x128xf32> -> vector<1x128xf32>
    %171 = arith.addf %169, %170 : vector<1x128xf32>
    %172 = arith.negf %171 : vector<1x128xf32>
    %173 = math.exp %172 : vector<1x128xf32>
    %cst_62 = arith.constant 1.000000e+00 : f32
    %174 = vector.broadcast %cst_62 : f32 to vector<1x128xf32>
    %175 = arith.addf %174, %173 : vector<1x128xf32>
    %176 = arith.divf %174, %175 : vector<1x128xf32>
    %177 = math.tanh %171 : vector<1x128xf32>
    %178 = vector.extract_strided_slice %176 {offsets = [0, 0], sizes = [1, 32], strides = [1, 1]} : vector<1x128xf32> to vector<1x32xf32>
    %179 = vector.extract_strided_slice %176 {offsets = [0, 32], sizes = [1, 32], strides = [1, 1]} : vector<1x128xf32> to vector<1x32xf32>
    %180 = vector.extract_strided_slice %177 {offsets = [0, 64], sizes = [1, 32], strides = [1, 1]} : vector<1x128xf32> to vector<1x32xf32>
    %181 = vector.extract_strided_slice %176 {offsets = [0, 96], sizes = [1, 32], strides = [1, 1]} : vector<1x128xf32> to vector<1x32xf32>
    %182 = arith.mulf %179, %163 : vector<1x32xf32>
    %183 = arith.mulf %178, %180 : vector<1x32xf32>
    %184 = arith.addf %182, %183 : vector<1x32xf32>
    %185 = math.tanh %184 : vector<1x32xf32>
    %186 = arith.mulf %181, %185 : vector<1x32xf32>
    %187 = arith.index_cast %c6_i32 : i32 to index
    %c0_63 = arith.constant 0 : index
    %188 = vector.load %arg11[%187, %c0_63] : memref<8x32xf32, #tpu.memory_space<vmem>>, vector<1x32xf32>
    tpu.vector_store %arg11[%187, %c0_63], %186 {strides = array<i32>} : memref<8x32xf32, #tpu.memory_space<vmem>>, vector<1x32xf32>,
    %c7_i32 = arith.constant 7 : i32
    %189 = arith.index_cast %c7_i32 : i32 to index
    %c0_64 = arith.constant 0 : index
    %190 = vector.load %arg10[%189, %c0_64] : memref<8x128xf32, #tpu.memory_space<vmem>>, vector<1x128xf32>
    %cst_65 = arith.constant dense<0.000000e+00> : vector<1x128xf32>
    %191 = tpu.matmul %186, %32, %cst_65 {dimension_numbers = #tpu.dot_dimension_numbers<[1], [0], [0], [1], [0, 0, 1, 1], [], []>} : vector<1x32xf32>, vector<32x128xf32>, vector<1x128xf32> -> vector<1x128xf32>
    %192 = arith.addf %190, %191 : vector<1x128xf32>
    %193 = arith.negf %192 : vector<1x128xf32>
    %194 = math.exp %193 : vector<1x128xf32>
    %cst_66 = arith.constant 1.000000e+00 : f32
    %195 = vector.broadcast %cst_66 : f32 to vector<1x128xf32>
    %196 = arith.addf %195, %194 : vector<1x128xf32>
    %197 = arith.divf %195, %196 : vector<1x128xf32>
    %198 = math.tanh %192 : vector<1x128xf32>
    %199 = vector.extract_strided_slice %197 {offsets = [0, 0], sizes = [1, 32], strides = [1, 1]} : vector<1x128xf32> to vector<1x32xf32>
    %200 = vector.extract_strided_slice %197 {offsets = [0, 32], sizes = [1, 32], strides = [1, 1]} : vector<1x128xf32> to vector<1x32xf32>
    %201 = vector.extract_strided_slice %198 {offsets = [0, 64], sizes = [1, 32], strides = [1, 1]} : vector<1x128xf32> to vector<1x32xf32>
    %202 = vector.extract_strided_slice %197 {offsets = [0, 96], sizes = [1, 32], strides = [1, 1]} : vector<1x128xf32> to vector<1x32xf32>
    %203 = arith.mulf %200, %184 : vector<1x32xf32>
    %204 = arith.mulf %199, %201 : vector<1x32xf32>
    %205 = arith.addf %203, %204 : vector<1x32xf32>
    %206 = math.tanh %205 : vector<1x32xf32>
    %207 = arith.mulf %202, %206 : vector<1x32xf32>
    %208 = arith.index_cast %c7_i32 : i32 to index
    %c0_67 = arith.constant 0 : index
    %209 = vector.load %arg11[%208, %c0_67] : memref<8x32xf32, #tpu.memory_space<vmem>>, vector<1x32xf32>
    tpu.vector_store %arg11[%208, %c0_67], %207 {strides = array<i32>} : memref<8x32xf32, #tpu.memory_space<vmem>>, vector<1x32xf32>,
    %c8_i32 = arith.constant 8 : i32
    %c0_68 = arith.constant 0 : index
    %c0_69 = arith.constant 0 : index
    %210 = vector.load %arg11[%c0_68, %c0_69] : memref<8x32xf32, #tpu.memory_space<vmem>>, vector<8x32xf32>
    %c0_70 = arith.constant 0 : index
    %c0_71 = arith.constant 0 : index
    %211 = vector.load %arg6[%c0_70, %c0_71] : memref<32x128xf32, #tpu.memory_space<vmem>>, vector<32x128xf32>
    %cst_72 = arith.constant dense<0.000000e+00> : vector<8x128xf32>
    %212 = tpu.matmul %210, %211, %cst_72 {dimension_numbers = #tpu.dot_dimension_numbers<[1], [0], [0], [1], [0, 0, 1, 1], [], []>} : vector<8x32xf32>, vector<32x128xf32>, vector<8x128xf32> -> vector<8x128xf32>
    %c0_73 = arith.constant 0 : index
    %c0_74 = arith.constant 0 : index
    %213 = vector.load %arg7[%c0_73, %c0_74] : memref<1x128xf32, #tpu.memory_space<vmem>>, vector<1x128xf32>
    %214 = vector.broadcast %213 : vector<1x128xf32> to vector<8x128xf32>
    %215 = arith.addf %212, %214 : vector<8x128xf32>
    %cst_75 = arith.constant dense<0xFF800000> : vector<8xf32>
    %216 = vector.multi_reduction <maximumf>, %215, %cst_75 [1] : vector<8x128xf32> to vector<8xf32>
    %217 = vector.shape_cast %216 : vector<8xf32> to vector<8x1xf32>
    %218 = vector.broadcast %217 : vector<8x1xf32> to vector<8x128xf32>
    %219 = arith.subf %215, %218 : vector<8x128xf32>
    %220 = math.exp %219 : vector<8x128xf32>
    %cst_76 = arith.constant dense<0.000000e+00> : vector<8xf32>
    %221 = vector.multi_reduction <add>, %220, %cst_76 [1] : vector<8x128xf32> to vector<8xf32>
    %222 = vector.shape_cast %221 : vector<8xf32> to vector<8x1xf32>
    %223 = math.log %222 : vector<8x1xf32>
    %224 = arith.addf %217, %223 : vector<8x1xf32>
    %225 = vector.broadcast %224 : vector<8x1xf32> to vector<8x128xf32>
    %226 = arith.subf %215, %225 : vector<8x128xf32>
    %c0_77 = arith.constant 0 : index
    %c0_78 = arith.constant 0 : index
    %227 = vector.load %arg8[%c0_77, %c0_78] : memref<8x128xf32, #tpu.memory_space<vmem>>, vector<8x128xf32>
    tpu.vector_store %arg8[%c0_77, %c0_78], %226 {strides = array<i32>} : memref<8x128xf32, #tpu.memory_space<vmem>>, vector<8x128xf32>,
    return
  }
  func.func @transform_0(%arg0: i32, %arg1: memref<8xi32, #tpu.memory_space<smem>>) -> (i32, i32) {
    %c0_i32 = arith.constant 0 : i32
    %c0_i32_0 = arith.constant 0 : i32
    %c0_i32_1 = arith.constant 0 : i32
    return %c0_i32, %c0_i32_0 : i32, i32
  }
  func.func @transform_1(%arg0: i32, %arg1: memref<8xi32, #tpu.memory_space<smem>>) -> (i32, i32) {
    %c0_i32 = arith.constant 0 : i32
    %c0_i32_0 = arith.constant 0 : i32
    %c0_i32_1 = arith.constant 0 : i32
    return %c0_i32, %c0_i32_0 : i32, i32
  }
  func.func @transform_2(%arg0: i32, %arg1: memref<8xi32, #tpu.memory_space<smem>>) -> (i32, i32) {
    %c0_i32 = arith.constant 0 : i32
    %c0_i32_0 = arith.constant 0 : i32
    %c0_i32_1 = arith.constant 0 : i32
    return %c0_i32, %c0_i32_0 : i32, i32
  }
  func.func @transform_3(%arg0: i32, %arg1: memref<8xi32, #tpu.memory_space<smem>>) -> (i32, i32) {
    %c0_i32 = arith.constant 0 : i32
    %c0_i32_0 = arith.constant 0 : i32
    %c0_i32_1 = arith.constant 0 : i32
    return %c0_i32, %c0_i32_0 : i32, i32
  }
  func.func @transform_4(%arg0: i32, %arg1: memref<8xi32, #tpu.memory_space<smem>>) -> (i32, i32) {
    %c0_i32 = arith.constant 0 : i32
    %c0_i32_0 = arith.constant 0 : i32
    %c0_i32_1 = arith.constant 0 : i32
    return %c0_i32, %c0_i32_0 : i32, i32
  }
  func.func @transform_5(%arg0: i32, %arg1: memref<8xi32, #tpu.memory_space<smem>>) -> (i32, i32) {
    %c0_i32 = arith.constant 0 : i32
    %c0_i32_0 = arith.constant 0 : i32
    %c0_i32_1 = arith.constant 0 : i32
    return %c0_i32, %c0_i32_0 : i32, i32
  }
  func.func @transform_6(%arg0: i32, %arg1: memref<8xi32, #tpu.memory_space<smem>>) -> (i32, i32) {
    %c0_i32 = arith.constant 0 : i32
    %c0_i32_0 = arith.constant 0 : i32
    %c0_i32_1 = arith.constant 0 : i32
    return %c0_i32, %c0_i32_0 : i32, i32
  }
}

</mosaic_0001>

<bundles_post_ra>
// kernel: tpu_custom_call.1
= control target key start
LH: loop header
LB: loop body
LE: loop exit
PB: predicated region body
PF: predicated region fallthrough
CT: control target
= control target key end

     0   :  { %s1539_s24 = smov [#allocation6]   ;;  %s1797_s0 = inlined_call_operand.hbm [shape: s32[8], index: 0, kind: input, shape index: {}]   ;;  %s1798_s1 = inlined_call_operand.hbm [shape: f32[20,32], index: 1, kind: input, shape index: {}]   ;;  %s1799_s2 = inlined_call_operand.hbm [shape: f32[32,128], index: 2, kind: input, shape index: {}]   ;;  %s1800_s3 = inlined_call_operand.hbm [shape: f32[32,128], index: 3, kind: input, shape index: {}]   ;;  %s1801_s4 = inlined_call_operand.vmem [shape: f32[1,128], index: 4, kind: input, shape index: {}]   ;;  %s1802_s5 = inlined_call_operand.hbm [shape: f32[32,128], index: 5, kind: input, shape index: {}]   ;;  %s1803_s6 = inlined_call_operand.vmem [shape: f32[1,128], index: 6, kind: input, shape index: {}]   ;;  %s1804_s7 = inlined_call_operand.hbm [shape: f32[8,128], index: 7, kind: output, shape index: {}]  }
   0x1   :  { %13 = dma.hbm_to_smem %s1797_s0, 16, %s1539_s24, [#allocation5] }
   0x2   :  { %1529 = dma.done.wait [#allocation5], 16 }
   0x3   :  { %1530 = vsyncadd [#allocation5], 4294967280 }
   0x4   :  { %15 = sfence }
   0x5   :  { %16 = vsyncpa [#allocation8], 0 }
   0x6   :  { %17 = vsyncpa [#allocation11], 0 }
   0x7   :  { %18 = vsyncpa [#allocation14], 0 }
   0x8   :  { %19 = vsyncpa [#allocation9], 0  ;;  %s1540_s27 = smov [#allocation10]   ;;  %s1541_s29 = smov [#allocation7]  }
   0x9   :  { %s37_s28 = sshll.u32 %s1540_s27, 4  ;;  %s25_s30 = sshll.u32 %s1541_s29, 4  ;;  %s38_s28 = int_to_ptr.vmem [resolvable:$true] %s37_s28  ;;  %s26_s30 = int_to_ptr.vmem [resolvable:$true] %s25_s30 }
   0xa   :  { %s1437_s8 = scalar_lea.vmem %s38_s28, 512  ;;  %p1442_p1 = scmp.lt.s32.totalorder %s38_s28, %s38_s28 }
   0xb   :  { %p1438_p0 = scmp.ne.s32.totalorder %s38_s28, %s1437_s8  ;;  %p1443_p2 = scmp.lt.s32.totalorder %s1437_s8, %s1437_s8 }
   0xd   :  { %p1444_p3 = por %p1443_p2, %p1442_p1 }
   0xf   :  { %p1445_p4 = pnand %p1444_p3, %p1438_p0 }
  0x11   :  { %1448 = shalt.err (!%p1445_p4)
}
  0x12   :  { %s1542_s0 = smov 128   ;;  %s1543_s9 = smov 8  }
  0x13   :  { %43 = dma.hbm_to_vmem [thread:$0]  %s1799_s2, 512, %s38_s28, [#allocation11], %s1542_s0, %s1542_s0, %s1543_s9  }
  0x14   :  { %s1457_s12 = scalar_lea.vmem %s26_s30, 384  ;;  %p1462_p6 = scmp.lt.s32.totalorder %s26_s30, %s26_s30 }
  0x15   :  { %p1458_p5 = scmp.ne.s32.totalorder %s26_s30, %s1457_s12  ;;  %p1463_p7 = scmp.lt.s32.totalorder %s1457_s12, %s1457_s12 }
  0x17   :  { %p1464_p8 = por %p1463_p7, %p1462_p6 }
  0x19   :  { %p1465_p9 = pnand %p1464_p8, %p1458_p5 }
  0x1b   :  { %1468 = shalt.err (!%p1465_p9)
}
  0x1c   :  { %31 = dma.hbm_to_vmem [thread:$0]  %s1798_s1, 384, %s26_s30, [#allocation8], %s1542_s0, %s1542_s0, %s1543_s9  }
  0x1d   :  { %s1544_s15 = smov [#allocation12]   ;;  %s1545_s17 = smov [#allocation13]  }
  0x1e   :  { %s49_s16 = sshll.u32 %s1544_s15, 4  ;;  %s63_s18 = sshll.u32 %s1545_s17, 4  ;;  %s50_s16 = int_to_ptr.vmem [resolvable:$true] %s49_s16  ;;  %s64_s18 = int_to_ptr.vmem [resolvable:$true] %s63_s18 }
  0x1f   :  { %s1477_s2 = scalar_lea.vmem %s50_s16, 512  ;;  %p1482_p11 = scmp.lt.s32.totalorder %s50_s16, %s50_s16 }
  0x20   :  { %p1478_p10 = scmp.ne.s32.totalorder %s50_s16, %s1477_s2  ;;  %p1483_p12 = scmp.lt.s32.totalorder %s1477_s2, %s1477_s2 }
  0x22   :  { %p1484_p13 = por %p1483_p12, %p1482_p11 }
  0x24   :  { %p1485_p0 = pnand %p1484_p13, %p1478_p10 }
  0x26   :  { %1488 = shalt.err (!%p1485_p0)
}
  0x27   :  { %55 = dma.hbm_to_vmem [thread:$0]  %s1800_s3, 512, %s50_s16, [#allocation11], %s1542_s0, %s1542_s0, %s1543_s9  }
  0x28   :  { %s1497_s1 = scalar_lea.vmem %s64_s18, 512  ;;  %p1502_p2 = scmp.lt.s32.totalorder %s64_s18, %s64_s18 }
  0x29   :  { %p1498_p1 = scmp.ne.s32.totalorder %s64_s18, %s1497_s1  ;;  %p1503_p3 = scmp.lt.s32.totalorder %s1497_s1, %s1497_s1 }
  0x2b   :  { %p1504_p4 = por %p1503_p3, %p1502_p2 }
  0x2d   :  { %p1505_p5 = pnand %p1504_p4, %p1498_p1 }
  0x2f   :  { %1508 = shalt.err (!%p1505_p5)
}
  0x30   :  { %69 = dma.hbm_to_vmem [thread:$0]  %s1802_s5, 512, %s64_s18, [#allocation14], %s1542_s0, %s1542_s0, %s1543_s9  }
  0x31   :  { %1531 = dma.done.wait [#allocation8], 384  }
  0x32   :  { %1532 = vsyncadd [#allocation8], 4294966912 }
  0x33   :  { %1533 = dma.done.wait [#allocation11], 1024  }
  0x34   :  { %1534 = vsyncadd [#allocation11], 4294966272 }
  0x35   :  { %1535 = dma.done.wait [#allocation14], 512  }
  0x36   :  { %1536 = vsyncadd [#allocation14], 4294966784  ;;  %v1546_v0 = vmov 0.0   ;;  %vm1547_vm0 = vmmov 0   ;;  %s84_s3 = sld [smem:[#allocation6]]  ;;  %vm87_vm1 = vcmask 253952  }
  0x37   :  { %1231 = vmatprep.subr.mxu0 %v1546_v0  ;;  %1239 = vmatprep.mubr.msk.f32.mxu0 %vm1547_vm0, %v1546_v0  ;;  %s1155_s23 = sld [smem:[#allocation6 + $0x1]]  ;;  %v126_v1 = vld [vmem:[#allocation10 + $0x18] sm:$0xff]  ;;  %v125_v2 = vld [vmem:[#allocation10 + $0x10] sm:$0xff]  ;;  %v124_v3 = vld [vmem:[#allocation10 + $0x8] sm:$0xff]  ;;  %vm133_vm2 = vcmask 261120   ;;  %s1548_s15 = smov 64  }
  0x38   :  { %1242 = vmatprep.subr.mxu1 %v1546_v0  ;;  %1250 = vmatprep.mubr.msk.f32.mxu1 %vm1547_vm0, %v1546_v0  ;;  %s1156_s5 = sld [smem:[#allocation6 + $0x2]]  ;;  %v1634_v6 = vld [vmem:[#allocation12 + $0x18] sm:$0xff]  ;;  %v1636_v7 = vld [vmem:[#allocation12 + $0x10] sm:$0xff]  ;;  %v123_v9 = vld [vmem:[#allocation10] sm:$0xff]  ;;  %s1550_s18 = smov [#allocation15]  }
  0x39   :  { %s1157_s24 = sld [smem:[#allocation6 + $0x3]]  ;;  %1232 = vmatpush3.msra.mxu0 %v126_v1  ;;  %1243 = vmatpush3.msra.mxu1 %v1634_v6  ;;  %v1643_v11 = vld [vmem:[#allocation12 + $0x8] sm:$0xff]  ;;  %v1652_v14 = vld [vmem:[#allocation12] sm:$0xff]  ;;  %v1162_v20 = vld [vmem:[%s1801_s4] ss:$0 sm:$0xff]  ;;  %s1549_s4 = smov 32  }
  0x3a   :  { %s1624_s25 = sld [smem:[#allocation6 + $0x4]]  ;;  %1233 = vmatprep.subr.mxu0 %v1546_v0  ;;  %1244 = vmatprep.subr.mxu1 %v1546_v0  ;;  %s1136_s2 = sshll.u32 %s1550_s18, 4  ;;  %s1137_s2 = int_to_ptr.vmem [resolvable:$true] %s1136_s2 }
  0x3b   :  { %s1626_s26 = sld [smem:[#allocation6 + $0x5]]  ;;  %1234 = vmatpush3.msra.mxu0 %v125_v2  ;;  %1245 = vmatpush3.msra.mxu1 %v1636_v7  ;;  %p1514_p7 = scmp.lt.s32.totalorder %s1137_s2, %s1137_s2 }
  0x3c   :  { %s1628_s27 = sld [smem:[#allocation6 + $0x6]]  ;;  %s85_s28 = scalar_lea.vmem [#allocation7], %s84_s3  ;;  %1235 = vmatprep.subr.mxu0 %v1546_v0  ;;  %1246 = vmatprep.subr.mxu1 %v1546_v0 }
  0x3d   :  { %v86_v4 = vld [vmem:[%s85_s28] sm:$0x1]  ;;  %s1630_s29 = sld [smem:[#allocation6 + $0x7]]  ;;  %s90_s30 = scalar_lea.vmem [#allocation7], %s1155_s23  ;;  %1236 = vmatpush3.msra.mxu0 %v124_v3  ;;  %1247 = vmatpush3.msra.mxu1 %v1643_v11 }
  0x3e   :  { %88 = vst.msk [vmem:[#allocation2] sm:$0x1] %vm87_vm1, %v86_v4  ;;  %v91_v5 = vld [vmem:[%s90_s30] sm:$0x1]  ;;  %s94_s8 = scalar_lea.vmem [#allocation7], %s1156_s5  ;;  %1237 = vmatprep.subr.mxu0 %v1546_v0  ;;  %1248 = vmatprep.subr.mxu1 %v1546_v0 }
  0x3f   :  { %92 = vst.msk [vmem:[#allocation2 + $0x1] sm:$0x1] %vm87_vm1, %v91_v5  ;;  %v95_v8 = vld [vmem:[%s94_s8] sm:$0x1]  ;;  %s98_s0 = scalar_lea.vmem [#allocation7], %s1157_s24  ;;  %1238 = vmatpush3.msra.mxu0 %v123_v9  ;;  %1249 = vmatpush3.msra.mxu1 %v1652_v14 }
  0x40   :  { %96 = vst.msk [vmem:[#allocation2 + $0x2] sm:$0x1] %vm87_vm1, %v95_v8  ;;  %v99_v10 = vld [vmem:[%s98_s0] sm:$0x1]  ;;  %s102_s9 = scalar_lea.vmem [#allocation7], %s1624_s25  ;;  %1253 = vmatprep.subr.mxu0 %v1546_v0  ;;  %1251 = vmatmul.mubr.f32.vlgmr.msra.gmra.mxu1 %v1546_v0 }
  0x41   :  { %100 = vst.msk [vmem:[#allocation2 + $0x3] sm:$0x1] %vm87_vm1, %v99_v10  ;;  %v103_v12 = vld [vmem:[%s102_s9] sm:$0x1]  ;;  %s106_s10 = scalar_lea.vmem [#allocation7], %s1626_s26  ;;  %1264 = vmatprep.subr.mxu1 %v1546_v0  ;;  %1272 = vmatprep.mubr.msk.f32.mxu1 %vm1547_vm0, %v1546_v0 }
  0x42   :  { %104 = vst.msk [vmem:[#allocation2 + $0x4] sm:$0x1] %vm87_vm1, %v103_v12  ;;  %v107_v13 = vld [vmem:[%s106_s10] sm:$0x1]  ;;  %s110_s11 = scalar_lea.vmem [#allocation7], %s1628_s27  ;;  %1265 = vmatpush3.msra.mxu1 %v1634_v6 }
  0x43   :  { %108 = vst.msk [vmem:[#allocation2 + $0x5] sm:$0x1] %vm87_vm1, %v107_v13  ;;  %v111_v15 = vld [vmem:[%s110_s11] sm:$0x1]  ;;  %s114_s12 = scalar_lea.vmem [#allocation7], %s1630_s29  ;;  %1266 = vmatprep.subr.mxu1 %v1546_v0 }
  0x44   :  { %112 = vst.msk [vmem:[#allocation2 + $0x6] sm:$0x1] %vm87_vm1, %v111_v15  ;;  %v115_v16 = vld [vmem:[%s114_s12] sm:$0x1]  ;;  %1267 = vmatpush3.msra.mxu1 %v1636_v7 }
  0x45   :  { %116 = vst.msk [vmem:[#allocation2 + $0x7] sm:$0x1] %vm87_vm1, %v115_v16  ;;  %1268 = vmatprep.subr.mxu1 %v1546_v0 }
  0x46   :  { %1269 = vmatpush3.msra.mxu1 %v1643_v11 }
  0x47   :  { %1270 = vmatprep.subr.mxu1 %v1546_v0 }
  0x48   :  { %1271 = vmatpush3.msra.mxu1 %v1652_v14 }
  0x49   :  { %1286 = vmatprep.subr.mxu1 %v1546_v0 }
  0x4c   :  { %v122_v17 = vld [vmem:[#allocation2] sm:$0xff] }
  0x4d   :  { %1240 = vmatmul.mubr.msk.f32.vlgmr.msra.gmra.mxu0 %vm133_vm2, %v122_v17 }
  0x4e   :  { %1254 = vmatpush3.msra.mxu0 %v1634_v6  ;;  %1261 = vmatprep.mubr.msk.f32.mxu0 %vm1547_vm0, %v1546_v0 }
  0x4f   :  { %1255 = vmatprep.subr.mxu0 %v1546_v0 }
  0x50   :  { %1256 = vmatpush3.msra.mxu0 %v1636_v7 }
  0x51   :  { %1257 = vmatprep.subr.mxu0 %v1546_v0 }
  0x52   :  { %1258 = vmatpush3.msra.mxu0 %v1643_v11 }
  0x53   :  { %1259 = vmatprep.subr.mxu0 %v1546_v0 }
  0x54   :  { %1260 = vmatpush3.msra.mxu0 %v1652_v14 }
  0x55   :  { %1275 = vmatprep.subr.mxu0 %v1546_v0 }
 0x100   :  { %v278_v18 = vpop.f32.mrf.mxu1 }
 0x102   :  { %v1252_v19 = vpop.f32.mrf.mxu1 }
 0x10d   :  { %v203_v21 = vpop.f32.mrf.mxu0 }
 0x10e   :  { %v204_v22 = vadd.f32 %v1162_v20, %v203_v21 }
 0x10f   :  { %v1241_v23 = vpop.f32.mrf.mxu0 }
 0x110   :  { %207 = vst [vmem:[#allocation3] sm:$0xff] %v204_v22 }
 0x117   :  { %v208_v24 = vld [vmem:[#allocation3] sm:$0x1]  ;;  %v312_v40 = vld [vmem:[#allocation3 + $0x1] sm:$0x1]  ;;  %v415_v58 = vld [vmem:[#allocation3 + $0x2] sm:$0x1] }
 0x118   :  { %v282_v25 = vadd.f32 %v278_v18, %v208_v24  ;;  %v518_v17 = vld [vmem:[#allocation3 + $0x3] sm:$0x1] }
 0x11a   :  { %1353 = vtanh.f32 %v282_v25  ;;  %v1164_v27 = vmul.f32 -1.442695, %v282_v25 }
 0x11c   :  { %1355 = vpow2.f32 %v1164_v27 }
 0x127   :  { %v1354_v26 = vpop.eup %1353 }
 0x128   :  { %292 = vrot.lane.b32.xlu0 %v1354_v26, %s1548_s15 }
 0x129   :  { %v1356_v28 = vpop.eup %1355 }
 0x12a   :  { %v286_v29 = vadd.f32 1.0, %v1356_v28 }
 0x12c   :  { %1357 = vrcp.f32 %v286_v29 }
 0x139   :  { %v1358_v30 = vpop.eup %1357 }
 0x13a   :  { %v290_v33 = vmul.f32 0.0, %v1358_v30 }
 0x19a   :  { %v293_v31 = vpop.permute.xlu0 %292 }
 0x19b   :  { %v295_v32 = vmul.f32 %v1358_v30, %v293_v31 }
 0x19d   :  { %297 = vrot.lane.b32.xlu0 %v295_v32, %s1549_s4 }
 0x20f   :  { %v298_v34 = vpop.permute.xlu0 %297 }
 0x210   :  { %v300_v35 = vadd.f32 %v298_v34, %v290_v33 }
 0x212   :  { %1359 = vtanh.f32 %v300_v35 }
 0x21f   :  { %v1360_v36 = vpop.eup %1359 }
 0x220   :  { %303 = vrot.lane.b32.xlu1 %v1360_v36, %s1548_s15 }
 0x292   :  { %v304_v37 = vpop.permute.xlu1 %303 }
 0x293   :  { %v306_v38 = vmul.f32 %v1358_v30, %v304_v37 }
 0x295   :  { %308 = vrot.lane.b32.xlu1 %v306_v38, %s1549_s4 }
 0x307   :  { %v309_v39 = vpop.permute.xlu1 %308 }
 0x308   :  { %311 = vst.msk [vmem:[#allocation4] sm:$0x1] %vm87_vm1, %v309_v39  ;;  %1262 = vmatmul.mubr.msk.f32.vlgmr.msra.gmra.mxu0 %vm133_vm2, %v309_v39 }
 0x309   :  { %1276 = vmatpush3.msra.mxu0 %v1634_v6  ;;  %1283 = vmatprep.mubr.msk.f32.mxu0 %vm1547_vm0, %v1546_v0 }
 0x30a   :  { %1277 = vmatprep.subr.mxu0 %v1546_v0 }
 0x30b   :  { %1278 = vmatpush3.msra.mxu0 %v1636_v7 }
 0x30c   :  { %1279 = vmatprep.subr.mxu0 %v1546_v0 }
 0x30d   :  { %1280 = vmatpush3.msra.mxu0 %v1643_v11 }
 0x30e   :  { %1281 = vmatprep.subr.mxu0 %v1546_v0 }
 0x30f   :  { %1282 = vmatpush3.msra.mxu0 %v1652_v14 }
 0x310   :  { %1297 = vmatprep.subr.mxu0 %v1546_v0 }
 0x3c8   :  { %v381_v41 = vpop.f32.mrf.mxu0 }
 0x3c9   :  { %v385_v42 = vadd.f32 %v381_v41, %v312_v40 }
 0x3ca   :  { %v1263_v43 = vpop.f32.mrf.mxu0 }
 0x3cb   :  { %1361 = vtanh.f32 %v385_v42  ;;  %v1166_v45 = vmul.f32 -1.442695, %v385_v42 }
 0x3cd   :  { %1363 = vpow2.f32 %v1166_v45 }
 0x3d8   :  { %v1362_v44 = vpop.eup %1361 }
 0x3d9   :  { %395 = vrot.lane.b32.xlu0 %v1362_v44, %s1548_s15 }
 0x3da   :  { %v1364_v46 = vpop.eup %1363 }
 0x3db   :  { %v389_v47 = vadd.f32 1.0, %v1364_v46 }
 0x3dd   :  { %1365 = vrcp.f32 %v389_v47 }
 0x3ea   :  { %v1366_v48 = vpop.eup %1365 }
 0x3eb   :  { %v393_v51 = vmul.f32 %v1366_v48, %v300_v35  ;;  %v621_v35 = vld [vmem:[#allocation3 + $0x4] sm:$0x1] }
 0x44b   :  { %v396_v49 = vpop.permute.xlu0 %395 }
 0x44c   :  { %v398_v50 = vmul.f32 %v1366_v48, %v396_v49 }
 0x44e   :  { %400 = vrot.lane.b32.xlu1 %v398_v50, %s1549_s4 }
 0x4c0   :  { %v401_v52 = vpop.permute.xlu1 %400 }
 0x4c1   :  { %v403_v53 = vadd.f32 %v401_v52, %v393_v51 }
 0x4c3   :  { %1367 = vtanh.f32 %v403_v53 }
 0x4d0   :  { %v1368_v54 = vpop.eup %1367 }
 0x4d1   :  { %406 = vrot.lane.b32.xlu0 %v1368_v54, %s1548_s15 }
 0x543   :  { %v407_v55 = vpop.permute.xlu0 %406 }
 0x544   :  { %v409_v56 = vmul.f32 %v1366_v48, %v407_v55 }
 0x546   :  { %411 = vrot.lane.b32.xlu1 %v409_v56, %s1549_s4 }
 0x5b8   :  { %v412_v57 = vpop.permute.xlu1 %411 }
 0x5b9   :  { %414 = vst.msk [vmem:[#allocation4 + $0x1] sm:$0x1] %vm87_vm1, %v412_v57  ;;  %1273 = vmatmul.mubr.msk.f32.vlgmr.msra.gmra.mxu1 %vm133_vm2, %v412_v57 }
 0x5ba   :  { %1287 = vmatpush3.msra.mxu1 %v1634_v6  ;;  %1294 = vmatprep.mubr.msk.f32.mxu1 %vm1547_vm0, %v1546_v0 }
 0x5bb   :  { %1288 = vmatprep.subr.mxu1 %v1546_v0 }
 0x5bc   :  { %1289 = vmatpush3.msra.mxu1 %v1636_v7 }
 0x5bd   :  { %1290 = vmatprep.subr.mxu1 %v1546_v0 }
 0x5be   :  { %1291 = vmatpush3.msra.mxu1 %v1643_v11 }
 0x5bf   :  { %1292 = vmatprep.subr.mxu1 %v1546_v0 }
 0x5c0   :  { %1293 = vmatpush3.msra.mxu1 %v1652_v14 }
 0x5c1   :  { %1308 = vmatprep.subr.mxu1 %v1546_v0 }
 0x679   :  { %v484_v59 = vpop.f32.mrf.mxu1 }
 0x67a   :  { %v488_v60 = vadd.f32 %v484_v59, %v415_v58 }
 0x67b   :  { %v1274_v61 = vpop.f32.mrf.mxu1 }
 0x67c   :  { %1369 = vtanh.f32 %v488_v60  ;;  %v1168_v63 = vmul.f32 -1.442695, %v488_v60 }
 0x67e   :  { %1371 = vpow2.f32 %v1168_v63 }
 0x689   :  { %v1370_v62 = vpop.eup %1369 }
 0x68a   :  { %498 = vrot.lane.b32.xlu0 %v1370_v62, %s1548_s15 }
 0x68b   :  { %v1372_v1 = vpop.eup %1371 }
 0x68c   :  { %v492_v2 = vadd.f32 1.0, %v1372_v1 }
 0x68e   :  { %1373 = vrcp.f32 %v492_v2 }
 0x69b   :  { %v1374_v3 = vpop.eup %1373 }
 0x69c   :  { %v496_v8 = vmul.f32 %v1374_v3, %v403_v53  ;;  %v724_v53 = vld [vmem:[#allocation3 + $0x5] sm:$0x1] }
 0x6fc   :  { %v499_v4 = vpop.permute.xlu0 %498 }
 0x6fd   :  { %v501_v5 = vmul.f32 %v1374_v3, %v499_v4  ;;  %v827_v4 = vld [vmem:[#allocation3 + $0x6] sm:$0x1] }
 0x6ff   :  { %503 = vrot.lane.b32.xlu1 %v501_v5, %s1549_s4 }
 0x771   :  { %v504_v9 = vpop.permute.xlu1 %503 }
 0x772   :  { %v506_v10 = vadd.f32 %v504_v9, %v496_v8 }
 0x774   :  { %1375 = vtanh.f32 %v506_v10 }
 0x781   :  { %v1376_v12 = vpop.eup %1375 }
 0x782   :  { %509 = vrot.lane.b32.xlu0 %v1376_v12, %s1548_s15 }
 0x7f4   :  { %v510_v13 = vpop.permute.xlu0 %509 }
 0x7f5   :  { %v512_v15 = vmul.f32 %v1374_v3, %v510_v13 }
 0x7f7   :  { %514 = vrot.lane.b32.xlu1 %v512_v15, %s1549_s4 }
 0x869   :  { %v515_v16 = vpop.permute.xlu1 %514 }
 0x86a   :  { %517 = vst.msk [vmem:[#allocation4 + $0x2] sm:$0x1] %vm87_vm1, %v515_v16  ;;  %1284 = vmatmul.mubr.msk.f32.vlgmr.msra.gmra.mxu0 %vm133_vm2, %v515_v16 }
 0x86b   :  { %1298 = vmatpush3.msra.mxu0 %v1634_v6  ;;  %1305 = vmatprep.mubr.msk.f32.mxu0 %vm1547_vm0, %v1546_v0 }
 0x86c   :  { %1299 = vmatprep.subr.mxu0 %v1546_v0 }
 0x86d   :  { %1300 = vmatpush3.msra.mxu0 %v1636_v7 }
 0x86e   :  { %1301 = vmatprep.subr.mxu0 %v1546_v0 }
 0x86f   :  { %1302 = vmatpush3.msra.mxu0 %v1643_v11 }
 0x870   :  { %1303 = vmatprep.subr.mxu0 %v1546_v0 }
 0x871   :  { %1304 = vmatpush3.msra.mxu0 %v1652_v14 }
 0x872   :  { %1319 = vmatprep.subr.mxu0 %v1546_v0 }
 0x92a   :  { %v587_v18 = vpop.f32.mrf.mxu0 }
 0x92b   :  { %v591_v19 = vadd.f32 %v587_v18, %v518_v17 }
 0x92c   :  { %v1285_v20 = vpop.f32.mrf.mxu0 }
 0x92d   :  { %1377 = vtanh.f32 %v591_v19  ;;  %v1170_v22 = vmul.f32 -1.442695, %v591_v19 }
 0x92f   :  { %1379 = vpow2.f32 %v1170_v22 }
 0x93a   :  { %v1378_v21 = vpop.eup %1377 }
 0x93b   :  { %601 = vrot.lane.b32.xlu0 %v1378_v21, %s1548_s15 }
 0x93c   :  { %v1380_v23 = vpop.eup %1379 }
 0x93d   :  { %v595_v24 = vadd.f32 1.0, %v1380_v23 }
 0x93f   :  { %1381 = vrcp.f32 %v595_v24 }
 0x94c   :  { %v1382_v25 = vpop.eup %1381 }
 0x94d   :  { %v599_v28 = vmul.f32 %v1382_v25, %v506_v10 }
 0x9ad   :  { %v602_v26 = vpop.permute.xlu0 %601 }
 0x9ae   :  { %v604_v27 = vmul.f32 %v1382_v25, %v602_v26  ;;  %v930_v26 = vld [vmem:[#allocation3 + $0x7] sm:$0x1] }
 0x9b0   :  { %606 = vrot.lane.b32.xlu1 %v604_v27, %s1549_s4 }
 0xa22   :  { %v607_v29 = vpop.permute.xlu1 %606 }
 0xa23   :  { %v609_v30 = vadd.f32 %v607_v29, %v599_v28 }
 0xa25   :  { %1383 = vtanh.f32 %v609_v30 }
 0xa32   :  { %v1384_v31 = vpop.eup %1383 }
 0xa33   :  { %612 = vrot.lane.b32.xlu0 %v1384_v31, %s1548_s15 }
 0xaa5   :  { %v613_v32 = vpop.permute.xlu0 %612 }
 0xaa6   :  { %v615_v33 = vmul.f32 %v1382_v25, %v613_v32 }
 0xaa8   :  { %617 = vrot.lane.b32.xlu1 %v615_v33, %s1549_s4 }
 0xb1a   :  { %v618_v34 = vpop.permute.xlu1 %617 }
 0xb1b   :  { %620 = vst.msk [vmem:[#allocation4 + $0x3] sm:$0x1] %vm87_vm1, %v618_v34  ;;  %1295 = vmatmul.mubr.msk.f32.vlgmr.msra.gmra.mxu1 %vm133_vm2, %v618_v34 }
 0xb1c   :  { %1309 = vmatpush3.msra.mxu1 %v1634_v6  ;;  %1316 = vmatprep.mubr.msk.f32.mxu1 %vm1547_vm0, %v1546_v0 }
 0xb1d   :  { %1310 = vmatprep.subr.mxu1 %v1546_v0 }
 0xb1e   :  { %1311 = vmatpush3.msra.mxu1 %v1636_v7 }
 0xb1f   :  { %1312 = vmatprep.subr.mxu1 %v1546_v0 }
 0xb20   :  { %1313 = vmatpush3.msra.mxu1 %v1643_v11 }
 0xb21   :  { %1314 = vmatprep.subr.mxu1 %v1546_v0 }
 0xb22   :  { %1315 = vmatpush3.msra.mxu1 %v1652_v14 }
 0xb23   :  { %1330 = vmatprep.subr.mxu1 %v1546_v0 }
 0xbdb   :  { %v690_v36 = vpop.f32.mrf.mxu1 }
 0xbdc   :  { %v694_v37 = vadd.f32 %v690_v36, %v621_v35 }
 0xbdd   :  { %v1296_v38 = vpop.f32.mrf.mxu1 }
 0xbde   :  { %1385 = vtanh.f32 %v694_v37  ;;  %v1172_v40 = vmul.f32 -1.442695, %v694_v37 }
 0xbe0   :  { %1387 = vpow2.f32 %v1172_v40 }
 0xbeb   :  { %v1386_v39 = vpop.eup %1385 }
 0xbec   :  { %704 = vrot.lane.b32.xlu0 %v1386_v39, %s1548_s15 }
 0xbed   :  { %v1388_v41 = vpop.eup %1387 }
 0xbee   :  { %v698_v42 = vadd.f32 1.0, %v1388_v41  ;;  %v1037_v41 = vld [vmem:[#allocation13 + $0x18] sm:$0xff] }
 0xbf0   :  { %1389 = vrcp.f32 %v698_v42  ;;  %v1036_v42 = vld [vmem:[#allocation13 + $0x10] sm:$0xff] }
 0xbfd   :  { %v1390_v43 = vpop.eup %1389 }
 0xbfe   :  { %v702_v46 = vmul.f32 %v1390_v43, %v609_v30 }
 0xc5e   :  { %v705_v44 = vpop.permute.xlu0 %704 }
 0xc5f   :  { %v707_v45 = vmul.f32 %v1390_v43, %v705_v44  ;;  %v1034_v44 = vld [vmem:[#allocation13] sm:$0xff] }
 0xc61   :  { %709 = vrot.lane.b32.xlu1 %v707_v45, %s1549_s4 }
 0xcd3   :  { %v710_v47 = vpop.permute.xlu1 %709 }
 0xcd4   :  { %v712_v48 = vadd.f32 %v710_v47, %v702_v46 }
 0xcd6   :  { %1391 = vtanh.f32 %v712_v48 }
 0xce3   :  { %v1392_v49 = vpop.eup %1391 }
 0xce4   :  { %715 = vrot.lane.b32.xlu0 %v1392_v49, %s1548_s15  ;;  %v1179_v49 = vld [vmem:[%s1803_s6] ss:$0 sm:$0xff]  ;;  %s1509_s6 = scalar_lea.vmem %s1137_s2, 128 }
 0xce5   :  { %p1510_p6 = scmp.ne.s32.totalorder %s1137_s2, %s1509_s6  ;;  %p1515_p8 = scmp.lt.s32.totalorder %s1509_s6, %s1509_s6 }
 0xce7   :  { %p1516_p9 = por %p1515_p8, %p1514_p7 }
 0xce9   :  { %p1517_p10 = pnand %p1516_p9, %p1510_p6 }
 0xd56   :  { %v716_v50 = vpop.permute.xlu0 %715 }
 0xd57   :  { %v718_v51 = vmul.f32 %v1390_v43, %v716_v50  ;;  %v1035_v43 = vld [vmem:[#allocation13 + $0x8] sm:$0xff] }
 0xd59   :  { %720 = vrot.lane.b32.xlu1 %v718_v51, %s1549_s4 }
 0xdcb   :  { %v721_v52 = vpop.permute.xlu1 %720 }
 0xdcc   :  { %723 = vst.msk [vmem:[#allocation4 + $0x4] sm:$0x1] %vm87_vm1, %v721_v52  ;;  %1306 = vmatmul.mubr.msk.f32.vlgmr.msra.gmra.mxu0 %vm133_vm2, %v721_v52 }
 0xdcd   :  { %1320 = vmatpush3.msra.mxu0 %v1634_v6  ;;  %1327 = vmatprep.mubr.msk.f32.mxu0 %vm1547_vm0, %v1546_v0 }
 0xdce   :  { %1321 = vmatprep.subr.mxu0 %v1546_v0 }
 0xdcf   :  { %1322 = vmatpush3.msra.mxu0 %v1636_v7 }
 0xdd0   :  { %1323 = vmatprep.subr.mxu0 %v1546_v0 }
 0xdd1   :  { %1324 = vmatpush3.msra.mxu0 %v1643_v11 }
 0xdd2   :  { %1325 = vmatprep.subr.mxu0 %v1546_v0 }
 0xdd3   :  { %1326 = vmatpush3.msra.mxu0 %v1652_v14 }
 0xe8c   :  { %v793_v54 = vpop.f32.mrf.mxu0 }
 0xe8d   :  { %v797_v55 = vadd.f32 %v793_v54, %v724_v53 }
 0xe8e   :  { %v1307_v56 = vpop.f32.mrf.mxu0 }
 0xe8f   :  { %1393 = vtanh.f32 %v797_v55  ;;  %v1174_v57 = vmul.f32 -1.442695, %v797_v55 }
 0xe91   :  { %1395 = vpow2.f32 %v1174_v57 }
 0xe9c   :  { %v1394_v6 = vpop.eup %1393 }
 0xe9d   :  { %807 = vrot.lane.b32.xlu0 %v1394_v6, %s1548_s15 }
 0xe9e   :  { %v1396_v58 = vpop.eup %1395 }
 0xe9f   :  { %v801_v7 = vadd.f32 1.0, %v1396_v58 }
 0xea1   :  { %1397 = vrcp.f32 %v801_v7 }
 0xeae   :  { %v1398_v59 = vpop.eup %1397 }
 0xeaf   :  { %v805_v61 = vmul.f32 %v1398_v59, %v712_v48 }
 0xf0f   :  { %v808_v60 = vpop.permute.xlu0 %807 }
 0xf10   :  { %v810_v11 = vmul.f32 %v1398_v59, %v808_v60 }
 0xf12   :  { %812 = vrot.lane.b32.xlu1 %v810_v11, %s1549_s4 }
 0xf84   :  { %v813_v14 = vpop.permute.xlu1 %812 }
 0xf85   :  { %v815_v62 = vadd.f32 %v813_v14, %v805_v61 }
 0xf87   :  { %1399 = vtanh.f32 %v815_v62 }
 0xf94   :  { %v1400_v63 = vpop.eup %1399 }
 0xf95   :  { %818 = vrot.lane.b32.xlu0 %v1400_v63, %s1548_s15 }
0x1007   :  { %v819_v1 = vpop.permute.xlu0 %818 }
0x1008   :  { %v821_v2 = vmul.f32 %v1398_v59, %v819_v1 }
0x100a   :  { %823 = vrot.lane.b32.xlu1 %v821_v2, %s1549_s4 }
0x107c   :  { %v824_v3 = vpop.permute.xlu1 %823 }
0x107d   :  { %826 = vst.msk [vmem:[#allocation4 + $0x5] sm:$0x1] %vm87_vm1, %v824_v3  ;;  %1317 = vmatmul.mubr.msk.f32.vlgmr.msra.gmra.mxu1 %vm133_vm2, %v824_v3 }
0x107e   :  { %1338 = vmatprep.mubr.msk.f32.mxu1 %vm1547_vm0, %v1546_v0  ;;  %1331 = vmatpush3.msra.mxu1 %v1037_v41 }
0x107f   :  { %1332 = vmatprep.subr.mxu1 %v1546_v0 }
0x1080   :  { %1333 = vmatpush3.msra.mxu1 %v1036_v42 }
0x1081   :  { %1334 = vmatprep.subr.mxu1 %v1546_v0 }
0x1082   :  { %1335 = vmatpush3.msra.mxu1 %v1035_v43 }
0x1083   :  { %1336 = vmatprep.subr.mxu1 %v1546_v0 }
0x1084   :  { %1337 = vmatpush3.msra.mxu1 %v1034_v44 }
0x113d   :  { %v896_v5 = vpop.f32.mrf.mxu1 }
0x113e   :  { %v900_v8 = vadd.f32 %v896_v5, %v827_v4 }
0x113f   :  { %v1318_v9 = vpop.f32.mrf.mxu1 }
0x1140   :  { %1401 = vtanh.f32 %v900_v8  ;;  %v1176_v12 = vmul.f32 -1.442695, %v900_v8 }
0x1142   :  { %1403 = vpow2.f32 %v1176_v12 }
0x114d   :  { %v1402_v10 = vpop.eup %1401 }
0x114e   :  { %910 = vrot.lane.b32.xlu0 %v1402_v10, %s1548_s15 }
0x114f   :  { %v1404_v13 = vpop.eup %1403 }
0x1150   :  { %v904_v15 = vadd.f32 1.0, %v1404_v13 }
0x1152   :  { %1405 = vrcp.f32 %v904_v15 }
0x115f   :  { %v1406_v16 = vpop.eup %1405 }
0x1160   :  { %v908_v19 = vmul.f32 %v1406_v16, %v815_v62 }
0x11c0   :  { %v911_v17 = vpop.permute.xlu0 %910 }
0x11c1   :  { %v913_v18 = vmul.f32 %v1406_v16, %v911_v17 }
0x11c3   :  { %915 = vrot.lane.b32.xlu1 %v913_v18, %s1549_s4 }
0x1235   :  { %v916_v20 = vpop.permute.xlu1 %915 }
0x1236   :  { %v918_v21 = vadd.f32 %v916_v20, %v908_v19 }
0x1238   :  { %1407 = vtanh.f32 %v918_v21 }
0x1245   :  { %v1408_v22 = vpop.eup %1407 }
0x1246   :  { %921 = vrot.lane.b32.xlu0 %v1408_v22, %s1548_s15 }
0x12b8   :  { %v922_v23 = vpop.permute.xlu0 %921 }
0x12b9   :  { %v924_v24 = vmul.f32 %v1406_v16, %v922_v23 }
0x12bb   :  { %926 = vrot.lane.b32.xlu1 %v924_v24, %s1549_s4 }
0x132d   :  { %v927_v25 = vpop.permute.xlu1 %926 }
0x132e   :  { %929 = vst.msk [vmem:[#allocation4 + $0x6] sm:$0x1] %vm87_vm1, %v927_v25  ;;  %1328 = vmatmul.mubr.msk.f32.vlgmr.msra.gmra.mxu0 %vm133_vm2, %v927_v25 }
0x13ee   :  { %v999_v27 = vpop.f32.mrf.mxu0 }
0x13ef   :  { %v1003_v28 = vadd.f32 %v999_v27, %v930_v26 }
0x13f0   :  { %v1329_v29 = vpop.f32.mrf.mxu0 }
0x13f1   :  { %1409 = vtanh.f32 %v1003_v28  ;;  %v1178_v31 = vmul.f32 -1.442695, %v1003_v28 }
0x13f3   :  { %1411 = vpow2.f32 %v1178_v31 }
0x13fe   :  { %v1410_v30 = vpop.eup %1409 }
0x13ff   :  { %1013 = vrot.lane.b32.xlu0 %v1410_v30, %s1548_s15 }
0x1400   :  { %v1412_v32 = vpop.eup %1411 }
0x1401   :  { %v1007_v33 = vadd.f32 1.0, %v1412_v32 }
0x1403   :  { %1413 = vrcp.f32 %v1007_v33 }
0x1410   :  { %v1414_v34 = vpop.eup %1413 }
0x1411   :  { %v1011_v37 = vmul.f32 %v1414_v34, %v918_v21 }
0x1471   :  { %v1014_v35 = vpop.permute.xlu0 %1013 }
0x1472   :  { %v1016_v36 = vmul.f32 %v1414_v34, %v1014_v35 }
0x1474   :  { %1018 = vrot.lane.b32.xlu1 %v1016_v36, %s1549_s4 }
0x14e6   :  { %v1019_v38 = vpop.permute.xlu1 %1018 }
0x14e7   :  { %v1021_v39 = vadd.f32 %v1019_v38, %v1011_v37 }
0x14e9   :  { %1415 = vtanh.f32 %v1021_v39 }
0x14f6   :  { %v1416_v40 = vpop.eup %1415 }
0x14f7   :  { %1024 = vrot.lane.b32.xlu0 %v1416_v40, %s1548_s15 }
0x1569   :  { %v1025_v45 = vpop.permute.xlu0 %1024 }
0x156a   :  { %v1027_v46 = vmul.f32 %v1414_v34, %v1025_v45 }
0x156c   :  { %1029 = vrot.lane.b32.xlu1 %v1027_v46, %s1549_s4 }
0x15de   :  { %v1030_v47 = vpop.permute.xlu1 %1029 }
0x15df   :  { %1032 = vst.msk [vmem:[#allocation4 + $0x7] sm:$0x1] %vm87_vm1, %v1030_v47 }
0x15e6   :  { %v1033_v48 = vld [vmem:[#allocation4] sm:$0xff] }
0x15e7   :  { %1339 = vmatmul.mubr.msk.f32.vlgmr.msra.gmra.mxu1 %vm133_vm2, %v1033_v48 }
0x16a7   :  { %v1114_v50 = vpop.f32.mrf.mxu1 }
0x16a8   :  { %v1115_v51 = vadd.f32 %v1179_v49, %v1114_v50 }
0x16a9   :  { %v1340_v52 = vpop.f32.mrf.mxu1 }
0x16aa   :  { %1118 = vmax.xlane.f32.xlu0 %v1115_v51 }
0x1733   :  { %v1119_v0 = vpop.xlane.xlu0 %1118 }
0x1734   :  { %v1120_v53 = vsub.f32 %v1115_v51, %v1119_v0 }
0x1736   :  { %v1121_v54 = vmul.f32 1.442695, %v1120_v53 }
0x1738   :  { %1417 = vpow2.f32 %v1121_v54 }
0x1745   :  { %v1418_v55 = vpop.eup %1417 }
0x1746   :  { %1123 = vadd.xlane.f32.xlu1 %v1418_v55 }
0x17cf   :  { %v1124_v56 = vpop.xlane.xlu1 %1123 }
0x17d0   :  { %1419 = vlog2.f32 %v1124_v56 }
0x17dd   :  { %v1420_v6 = vpop.eup %1419 }
0x17de   :  { %v1126_v57 = vmul.f32 0.6931472, %v1420_v6 }
0x17e0   :  { %v1127_v58 = vadd.f32 %v1126_v57, %v1119_v0 }
0x17e2   :  { %v1128_v7 = vsub.f32 %v1115_v51, %v1127_v58 }
0x17e4   :  { %1129 = vst [vmem:[#allocation15] sm:$0xff] %v1128_v7 }
0x17e5   :  { %1520 = shalt.err (!%p1517_p10)
}
0x17e6   :  { %1139 = dma.vmem_to_hbm [thread:$0]  %s1137_s2, 128, %s1804_s7, [#allocation9]  }
0x17e7   :  { %1537 = dma.done.wait [#allocation9], 128  }
0x17e8   :  { %1538 = vsyncadd [#allocation9], 4294967168 }
0x17e9   :  { %1143 = vsyncpa [#allocation8], 1 }
0x17ea   :  { %1144 = vsyncpa [#allocation11], 1 }
0x17eb   :  { %1145 = vsyncpa [#allocation14], 1 }
0x17ec   :  { %1146 = vsyncpa [#allocation9], 1 }

</bundles_post_ra>
